<compile_context>
chip_gen: v5e
topology: v5e:2x2
jax: 0.10.0
libtpu: 0.0.40
codegen_flags: <defaults>
</compile_context>

<pallas_src>
import functools

import jax
import jax.numpy as jnp
from jax.experimental import pallas as pl
from jax.experimental.pallas import tpu as pltpu


def _round_up(x: int, m: int) -> int:
    return ((x + m - 1) // m) * m


def _vmem_capacity_bytes() -> int:
    try:
        return int(pltpu.get_tpu_info().vmem_capacity_bytes)
    except Exception:
        return 64 * 1024 * 1024  # conservative (v7x per-TC VMEM)


def _cross_modal_kernel(img_ref, meta_ref, w_ref, b_ref, out_ref):
    # x = [meta | img]  (tb, 2D) bf16 ;  w = [[Wv@Wo], [Wo]]  (2D, D) bf16.
    x = jnp.concatenate(
        [meta_ref[...].astype(jnp.bfloat16), img_ref[...].astype(jnp.bfloat16)],
        axis=-1)
    # Single fused K=2D MXU matmul, f32 accumulation; bias added on the VPU.
    acc = jnp.dot(x, w_ref[...], preferred_element_type=jnp.float32)
    out_ref[...] = (acc + b_ref[...]).astype(out_ref.dtype)


@functools.partial(jax.jit, static_argnames=("row_tile",))
def cross_modal_attention(image_features, metadata_features, params, *, row_tile=512):
    """image_features, metadata_features: (B, D) float32. params: dict of weights."""
    B, D = image_features.shape
    out_dtype = image_features.dtype

    # ---- trace-time parameter fusion (f32), then bf16 for the MXU ----------
    wv = params["wv"].astype(jnp.float32)          # (D, D), stored (in, out)
    wo = params["wo"].astype(jnp.float32)          # (D, D)
    bv = params["bv"].astype(jnp.float32).reshape(1, D)
    bo = params["bo"].astype(jnp.float32).reshape(1, D)
    w_mv = wv @ wo                                  # (D, D)  meta path
    b_fused = bv @ wo + bo                          # (1, D)  fused bias (kept f32)
    w_stacked = jnp.concatenate([w_mv, wo], axis=0).astype(jnp.bfloat16)  # (2D, D)

    # TODO(synk): if D is not a multiple of 128 the (tb, D) output block falls
    # back to masked lane stores; pad D wrapper-side for lane-dense stores.
    # TODO(synk): for very large D (f32-resident weights >~ VMEM) stream (D, tn)
    # weight column blocks over an extra "arbitrary" grid axis instead of
    # keeping the stacked slab resident.

    # ---- generation-aware tile size / VMEM budget ---------------------------
    vmem_cap = _vmem_capacity_bytes()
    budget = int(0.85 * vmem_cap)
    # Resident: stacked bf16 weight (double-buffered by the pipeline) + f32 bias.
    weight_bytes = 2 * (2 * D * D) * 2 + 2 * D * 4
    # Per row of tb: double-buffered img/meta/out f32 tiles + bf16 concat temp.
    per_row = 2 * 3 * D * 4 + 2 * D * 2
    avail = max(budget - weight_bytes, 8 * per_row)
    tb_vmem = max(8, (avail // per_row) // 8 * 8)
    tb_grid = max(8, _round_up(pl.cdiv(B, 4), 8))   # aim for >= ~4 grid steps
    tb = max(8, min(row_tile, tb_vmem, tb_grid, _round_up(B, 8)))
    grid = (pl.cdiv(B, tb),)                         # ragged last block is masked

    vmem_limit = min(int(0.9 * vmem_cap),
                     max(4 * 1024 * 1024, weight_bytes + per_row * tb + (1 << 20)))

    # Activations: tiled over B, full D (lane-dense). Weights/bias: resident.
    act_spec = pl.BlockSpec((tb, D), lambda i: (i, 0))
    w_spec = pl.BlockSpec((2 * D, D), lambda i: (0, 0))
    b_spec = pl.BlockSpec((1, D), lambda i: (0, 0))

    cost = pl.CostEstimate(
        flops=2 * B * (2 * D) * D,                     # one (B,2D)@(2D,D) matmul
        transcendentals=0,
        bytes_accessed=3 * B * D * 4 + 2 * D * D * 2 + D * 4,
    )

    return pl.pallas_call(
        _cross_modal_kernel,
        out_shape=jax.ShapeDtypeStruct((B, D), out_dtype),
        grid_spec=pltpu.PrefetchScalarGridSpec(
            num_scalar_prefetch=0,
            grid=grid,
            in_specs=[act_spec, act_spec, w_spec, b_spec],
            out_specs=act_spec,
        ),
        compiler_params=pltpu.CompilerParams(
            dimension_semantics=("parallel",),        # megacore sharding on v7x
            vmem_limit_bytes=vmem_limit,
        ),
        cost_estimate=cost,
    )(image_features, metadata_features, w_stacked, b_fused)


def init_params(key, feature_dim):
    """Deterministic parameter init (uniform, mimicking nn.Linear's fan_in bound)."""
    bound = 1.0 / (feature_dim ** 0.5)
    keys = jax.random.split(key, 8)

    def u(k, shape):
        return jax.random.uniform(k, shape, jnp.float32, -bound, bound)

    return {
        # weights stored as (D_in, D_out) == PyTorch weight transposed
        "wq": u(keys[0], (feature_dim, feature_dim)),
        "bq": u(keys[1], (1, feature_dim)),
        "wk": u(keys[2], (feature_dim, feature_dim)),
        "bk": u(keys[3], (1, feature_dim)),
        "wv": u(keys[4], (feature_dim, feature_dim)),
        "bv": u(keys[5], (1, feature_dim)),
        "wo": u(keys[6], (feature_dim, feature_dim)),
        "bo": u(keys[7], (1, feature_dim)),
    }


def _reference(image_features, metadata_features, params):
    """Pure-JAX reference mirroring the PyTorch forward exactly (full Q/K/softmax path)."""
    q = image_features @ params["wq"] + params["bq"]
    k = metadata_features @ params["wk"] + params["bk"]
    v = metadata_features @ params["wv"] + params["bv"]
    D = image_features.shape[-1]
    scores = jnp.einsum("bij,bjk->bik", q[:, None, :], k[:, :, None]) / jnp.sqrt(
        jnp.asarray(D, jnp.float32))                       # (B,1,1)
    weights = jax.nn.softmax(scores, axis=-1)              # (B,1,1) == 1.0
    context = jnp.einsum("bij,bjk->bik", weights, v[:, None, :])[:, 0, :]
    return (context + image_features) @ params["wo"] + params["bo"]


if __name__ == "__main__":
    # Small but MXU/lane-aligned shapes: batch=256, feature_dim=128.
    B, D = 256, 128

    key = jax.random.PRNGKey(0)
    k_img, k_meta, k_params = jax.random.split(key, 3)

    image_features = jax.random.normal(k_img, (B, D), jnp.float32)
    metadata_features = jax.random.normal(k_meta, (B, D), jnp.float32)
    params = init_params(k_params, D)

    out = cross_modal_attention(image_features, metadata_features, params)
    out = jax.block_until_ready(out)

    ref = _reference(image_features, metadata_features, params)
    assert out.shape == (B, D)
    # bf16 MXU inputs + pre-fused Wv@Wo -> relaxed tolerance vs. the f32 reference.
    assert jnp.allclose(out, ref, atol=3e-2, rtol=3e-2), "mismatch vs reference"

    # Also exercise an unaligned batch (ragged last grid block path).
    out2 = jax.block_until_ready(
        cross_modal_attention(image_features[:37], metadata_features[:37], params))
    ref2 = _reference(image_features[:37], metadata_features[:37], params)
    assert out2.shape == (37, D)
    assert jnp.allclose(out2, ref2, atol=3e-2, rtol=3e-2), "mismatch vs reference (ragged)"

    print("KERNEL_OK")
</pallas_src>

<mosaic_0001>
module attributes {stable_mosaic.version = 11 : i64} {
  func.func @_cross_modal_kernel(%arg0: i32, %arg1: memref<64x128xf32, #tpu.memory_space<vmem>>, %arg2: memref<64x128xf32, #tpu.memory_space<vmem>>, %arg3: memref<256x128xbf16, #tpu.memory_space<vmem>>, %arg4: memref<1x128xf32, #tpu.memory_space<vmem>>, %arg5: memref<64x128xf32, #tpu.memory_space<vmem>>) attributes {dimension_semantics = [#tpu.dimension_semantics<parallel>], iteration_bounds = array<i64: 4>, scalar_prefetch = 0 : i64, scratch_operands = 0 : i64, tpu.core_type = #tpu.core_type<tc>, window_params = [{transform_indices = @transform_0, window_bounds = array<i64: 64, 128>}, {transform_indices = @transform_1, window_bounds = array<i64: 64, 128>}, {pipeline_mode = #tpu.pipeline_mode<synchronous>, transform_indices = @transform_2, window_bounds = array<i64: 256, 128>}, {pipeline_mode = #tpu.pipeline_mode<synchronous>, transform_indices = @transform_3, window_bounds = array<i64: 1, 128>}, {transform_indices = @transform_4, window_bounds = array<i64: 64, 128>}]} {
    %c0 = arith.constant 0 : index
    %c0_0 = arith.constant 0 : index
    %0 = vector.load %arg2[%c0, %c0_0] : memref<64x128xf32, #tpu.memory_space<vmem>>, vector<64x128xf32>
    %1 = arith.truncf %0 : vector<64x128xf32> to vector<64x128xbf16>
    %c0_1 = arith.constant 0 : index
    %c0_2 = arith.constant 0 : index
    %2 = vector.load %arg1[%c0_1, %c0_2] : memref<64x128xf32, #tpu.memory_space<vmem>>, vector<64x128xf32>
    %3 = arith.truncf %2 : vector<64x128xf32> to vector<64x128xbf16>
    %4 = tpu.concatenate %1, %3 in 1 : vector<64x128xbf16>, vector<64x128xbf16> -> vector<64x256xbf16>
    %c0_3 = arith.constant 0 : index
    %c0_4 = arith.constant 0 : index
    %5 = vector.load %arg3[%c0_3, %c0_4] : memref<256x128xbf16, #tpu.memory_space<vmem>>, vector<256x128xbf16>
    %cst = arith.constant dense<0.000000e+00> : vector<64x128xf32>
    %6 = tpu.matmul %4, %5, %cst {dimension_numbers = #tpu.dot_dimension_numbers<[1], [0], [0], [1], [0, 0, 1, 1], [], []>} : vector<64x256xbf16>, vector<256x128xbf16>, vector<64x128xf32> -> vector<64x128xf32>
    %c0_5 = arith.constant 0 : index
    %c0_6 = arith.constant 0 : index
    %7 = vector.load %arg4[%c0_5, %c0_6] : memref<1x128xf32, #tpu.memory_space<vmem>>, vector<1x128xf32>
    %8 = vector.broadcast %7 : vector<1x128xf32> to vector<64x128xf32>
    %9 = arith.addf %6, %8 : vector<64x128xf32>
    %c0_7 = arith.constant 0 : index
    %c0_8 = arith.constant 0 : index
    %10 = vector.load %arg5[%c0_7, %c0_8] : memref<64x128xf32, #tpu.memory_space<vmem>>, vector<64x128xf32>
    tpu.vector_store %arg5[%c0_7, %c0_8], %9 {strides = array<i32>} : memref<64x128xf32, #tpu.memory_space<vmem>>, vector<64x128xf32>,
    return
  }
  func.func @transform_0(%arg0: i32) -> (i32, i32) {
    %c0_i32 = arith.constant 0 : i32
    %c0_i32_0 = arith.constant 0 : i32
    return %arg0, %c0_i32 : i32, i32
  }
  func.func @transform_1(%arg0: i32) -> (i32, i32) {
    %c0_i32 = arith.constant 0 : i32
    %c0_i32_0 = arith.constant 0 : i32
    return %arg0, %c0_i32 : i32, i32
  }
  func.func @transform_2(%arg0: i32) -> (i32, i32) {
    %c0_i32 = arith.constant 0 : i32
    %c0_i32_0 = arith.constant 0 : i32
    %c0_i32_1 = arith.constant 0 : i32
    return %c0_i32, %c0_i32_0 : i32, i32
  }
  func.func @transform_3(%arg0: i32) -> (i32, i32) {
    %c0_i32 = arith.constant 0 : i32
    %c0_i32_0 = arith.constant 0 : i32
    %c0_i32_1 = arith.constant 0 : i32
    return %c0_i32, %c0_i32_0 : i32, i32
  }
  func.func @transform_4(%arg0: i32) -> (i32, i32) {
    %c0_i32 = arith.constant 0 : i32
    %c0_i32_0 = arith.constant 0 : i32
    return %arg0, %c0_i32 : i32, i32
  }
}

</mosaic_0001>

<bundles_post_ra>
// kernel: cross_modal_attention.1
= control target key start
LH: loop header
LB: loop body
LE: loop exit
PB: predicated region body
PF: predicated region fallthrough
CT: control target
= control target key end

     0   :  { %9 = vsyncpa [#allocation3], 0  ;;  %s1006_s0 = inlined_call_operand.vmem [shape: f32[256,128], index: 0, kind: input, shape index: {}]   ;;  %s1007_s1 = inlined_call_operand.vmem [shape: f32[256,128], index: 1, kind: input, shape index: {}]   ;;  %s1008_s2 = inlined_call_operand.vmem [shape: bf16[256,128], index: 2, kind: input, shape index: {}]   ;;  %s1009_s3 = inlined_call_operand.vmem [shape: f32[1,128], index: 3, kind: input, shape index: {}]   ;;  %s1010_s4 = inlined_call_operand.hbm [shape: f32[256,128], index: 4, kind: output, shape index: {}]  }
   0x1   :  { %11 = vsyncpa [#allocation3 + $0x1], 0  ;;  %s833_s15 = smov 0   ;;  %s835_s16 = smov 0  }
   0x2   :  { %s837_s17 = smov 0   ;;  %s839_s18 = smov 0  }
   0x3 LB: > { %s854_s19 = sadd.s32 4294967295, %s804_s18   ;;  %s589_s20 = sadd.s32 4294967294, %s804_s18   ;;  %s804_s18 = sphi %s839_s18, %s1016_s18   ;;  %s800_s17 = sphi %s837_s17, %s1015_s17   ;;  %s796_s16 = sphi %s835_s16, %s1014_s16   ;;  %s792_s15 = sphi %s833_s15, %s1013_s15  }
   0x4   : > { %s858_s21 = sadd.s32 1, %s804_s18   ;;  %s118_s22 = sadd.s32 1, %s800_s17 }
   0x5   : > { %s115_s23 = ssub.s32 %s804_s18, %s858_s21  ;;  %p128_p0 = scmp.ne.s32.totalorder %s800_s17, %s796_s16 }
   0x6   : > { %p116_p1 = scmp.eq.s32.totalorder %s115_s23, 0  ;;  %p129_p2 = scmp.eq.s32.totalorder %s854_s19, 3 }
   0x7   : > { %p134_p3 = scmp.ne.s32.totalorder %s796_s16, %s792_s15  ;;  %p135_p4 = scmp.eq.s32.totalorder %s589_s20, 3 }
   0x8   : > { %s869_s24 = scalar_select %p116_p1, %s800_s17, %s118_s22  }
   0x9   : > { %p871_p5 = por %p129_p2, %p128_p0  ;;  %p875_p6 = por %p135_p4, %p134_p3 }
   0xa   : > { %p592_p7 = scmp.ge.s32.totalorder %s804_s18, 1  ;;  %p177_p8 = scmp.lt.s32.totalorder %s804_s18, 5 }
   0xc   : > { %p178_p9 = pnand %p592_p7, %p177_p8 }
   0xd   : > { %s594_s5 = sshll.u32 (!%p178_p9), %s854_s19, 3  ;;  %s683_s12 = sshll.u32 (!%p178_p9), %s854_s19, 6 }
   0xe   : > { %181 = sbr.rel (%p178_p9) target bundleno = 215 (0xd7), region = 36  ;;  %p209_p10 = scmp.lt.s32.totalorder (!%p178_p9), %s594_s5, 31 }
   0xf   : > { %s511_s20 = scalar_lea.hbm (!%p178_p9), %s1010_s4, %s683_s12  ;;  %s762_s6 = scalar_lea.hbm (!%p178_p9), %s1010_s4, 256 }
  0x10   : > { %s514_s23 = sshll.u32 (!%p178_p9), %s511_s20, 4  ;;  %s515_s23 = int_to_ptr.hbm [resolvable:$true] %s514_s23 }
  0x13   : > { %v674_v0 = vld [vmem:[%s1008_s2 + $0x38] sm:$0xff]  ;;  %v673_v2 = vld [vmem:[%s1008_s2 + $0x30] sm:$0xff]  ;;  %v672_v4 = vld [vmem:[%s1008_s2 + $0x28] sm:$0xff]  ;;  %s1018_s5 = smov (!%p209_p10, %s594_s5), 31 }
  0x14   : > { %v682_v1 = vld [vmem:[%s1008_s2 + $0x78] sm:$0xff]  ;;  %433 = vmatpush.bf16.msra.mxu0 %v674_v0  ;;  %684 = vmatpush.bf16.msra.mxu2 %v674_v0  ;;  %v681_v3 = vld [vmem:[%s1008_s2 + $0x70] sm:$0xff]  ;;  %v680_v5 = vld [vmem:[%s1008_s2 + $0x68] sm:$0xff]  ;;  %s595_s27 = sshll.u32 %s1018_s5, 3 }
  0x15   : > { %462 = vmatpush.bf16.msra.mxu1 %v682_v1  ;;  %692 = vmatpush.bf16.msra.mxu3 %v682_v1  ;;  %v671_v6 = vld [vmem:[%s1008_s2 + $0x20] sm:$0xff]  ;;  %v670_v8 = vld [vmem:[%s1008_s2 + $0x18] sm:$0xff]  ;;  %s912_s7 = scalar_lea.vmem %s1007_s1, %s595_s27  ;;  %s920_s11 = scalar_lea.vmem %s1006_s0, %s595_s27  ;;  %v669_v10 = vld [vmem:[%s1008_s2 + $0x10] sm:$0xff] }
  0x16   : > { %v679_v7 = vld [vmem:[%s1008_s2 + $0x60] sm:$0xff]  ;;  %v678_v9 = vld [vmem:[%s1008_s2 + $0x58] sm:$0xff]  ;;  %v677_v11 = vld [vmem:[%s1008_s2 + $0x50] sm:$0xff]  ;;  %s756_s27 = sshra.s32 %s515_s23, 4  ;;  %s757_s27 = int_to_ptr.hbm [resolvable:$true] %s756_s27 }
  0x17   : > { %v221_v12 = vld [vmem:[%s912_s7] sm:$0xff]  ;;  %v222_v13 = vld [vmem:[%s912_s7 + $0x8] sm:$0xff]  ;;  %v223_v44 = vld [vmem:[%s912_s7 + $0x10] sm:$0xff]  ;;  %s758_s28 = scalar_lea.hbm %s757_s27, 64  ;;  %p763_p0 = scmp.lt.s32.totalorder %s757_s27, %s1010_s4 }
  0x18   : > { %434 = vmatpush.bf16.msra.mxu0 %v673_v2  ;;  %685 = vmatpush.bf16.msra.mxu2 %v673_v2  ;;  %v225_v14 = vld [vmem:[%s912_s7 + $0x20] sm:$0xff]  ;;  %v226_v15 = vld [vmem:[%s912_s7 + $0x28] sm:$0xff]  ;;  %v229_v20 = vpack.c.bf16 %v221_v12, %v221_v12  ;;  %v230_v21 = vpack.c.bf16 %v222_v13, %v222_v13  ;;  %v224_v45 = vld [vmem:[%s912_s7 + $0x18] sm:$0xff]  ;;  %v231_v52 = vpack.c.bf16 %v223_v44, %v223_v44  ;;  %p759_p11 = scmp.ne.s32.totalorder %s757_s27, %s758_s28  ;;  %p764_p1 = scmp.lt.s32.totalorder %s762_s6, %s758_s28 }
  0x19   : > { %463 = vmatpush.bf16.msra.mxu1 %v681_v3  ;;  %693 = vmatpush.bf16.msra.mxu3 %v681_v3  ;;  %v237_v16 = vld [vmem:[%s920_s11] sm:$0xff]  ;;  %v238_v17 = vld [vmem:[%s920_s11 + $0x8] sm:$0xff]  ;;  %v233_v22 = vpack.c.bf16 %v225_v14, %v225_v14  ;;  %v234_v23 = vpack.c.bf16 %v226_v15, %v226_v15  ;;  %v227_v46 = vld [vmem:[%s912_s7 + $0x30] sm:$0xff]  ;;  %v232_v53 = vpack.c.bf16 %v224_v45, %v224_v45 }
  0x1a   : > { %v241_v18 = vld [vmem:[%s920_s11 + $0x20] sm:$0xff]  ;;  %v242_v19 = vld [vmem:[%s920_s11 + $0x28] sm:$0xff]  ;;  %v245_v24 = vpack.c.bf16 %v237_v16, %v237_v16  ;;  %v246_v26 = vpack.c.bf16 %v238_v17, %v238_v17  ;;  %v261_v30 = vunpack.c.l.b16 %v229_v20  ;;  %v262_v31 = vunpack.c.l.b16 %v230_v21  ;;  %v228_v47 = vld [vmem:[%s912_s7 + $0x38] sm:$0xff]  ;;  %s205_s7 = sand.u32 1, %s796_s16   ;;  %p760_p12 = pnand %p759_p11, %p871_p5 }
  0x1b   : > { %v668_v25 = vld [vmem:[%s1008_s2 + $0x8] sm:$0xff]  ;;  %v249_v27 = vpack.c.bf16 %v241_v18, %v241_v18  ;;  %v250_v28 = vpack.c.bf16 %v242_v19, %v242_v19  ;;  %v265_v32 = vunpack.c.l.b16 %v233_v22  ;;  %v266_v33 = vunpack.c.l.b16 %v234_v23  ;;  %v667_v34 = vld [vmem:[%s1008_s2] sm:$0xff]  ;;  %v239_v48 = vld [vmem:[%s920_s11 + $0x10] sm:$0xff]  ;;  %s593_s10 = sshll.u32 %s205_s7, 6  ;;  %s500_s19 = scalar_lea.sflag [#allocation3], %s205_s7 }
  0x1c   : > { %435 = vmatpush.bf16.msra.mxu0 %v672_v4  ;;  %686 = vmatpush.bf16.msra.mxu2 %v672_v4  ;;  %v676_v29 = vld [vmem:[%s1008_s2 + $0x48] sm:$0xff]  ;;  %v285_v35 = vunpack.c.l.b16 %v245_v24  ;;  %v286_v36 = vunpack.c.l.b16 %v246_v26  ;;  %v675_v39 = vld [vmem:[%s1008_s2 + $0x40] sm:$0xff]  ;;  %v269_v40 = vpack.c.b16 %v262_v31, %v261_v30  ;;  %v240_v49 = vld [vmem:[%s920_s11 + $0x18] sm:$0xff]  ;;  %v235_v54 = vpack.c.bf16 %v227_v46, %v227_v46  ;;  %p761_p13 = pneg %p760_p12  ;;  %p765_p2 = por %p764_p1, %p763_p0 }
  0x1d   : > { %464 = vmatpush.bf16.msra.mxu1 %v680_v5  ;;  %694 = vmatpush.bf16.msra.mxu3 %v680_v5  ;;  %v289_v37 = vunpack.c.l.b16 %v249_v27  ;;  %v290_v38 = vunpack.c.l.b16 %v250_v28  ;;  %v271_v41 = vpack.c.b16 %v266_v33, %v265_v32  ;;  %v243_v50 = vld [vmem:[%s920_s11 + $0x30] sm:$0xff]  ;;  %v244_v51 = vld [vmem:[%s920_s11 + $0x38] sm:$0xff]  ;;  %v236_v55 = vpack.c.bf16 %v228_v47, %v228_v47  ;;  %s962_s11 = scalar_lea.vmem [#allocation2], %s593_s10 }
  0x1e   : > { %v293_v42 = vpack.c.b16 %v286_v36, %v285_v35  ;;  %v247_v56 = vpack.c.bf16 %v239_v48, %v239_v48  ;;  %v248_v57 = vpack.c.bf16 %v240_v49, %v240_v49  ;;  %v251_v58 = vpack.c.bf16 %v243_v50, %v243_v50  ;;  %s512_s22 = sshll.u32 %s962_s11, 4  ;;  %p766_p3 = pnand %p765_p2, %p761_p13  ;;  %s513_s22 = int_to_ptr.vmem [resolvable:$true] %s512_s22 }
  0x1f   : > { %v295_v43 = vpack.c.b16 %v290_v38, %v289_v37  ;;  %v252_v59 = vpack.c.bf16 %v244_v51, %v244_v51  ;;  %v263_v60 = vunpack.c.l.b16 %v231_v52  ;;  %v264_v61 = vunpack.c.l.b16 %v232_v53 }
  0x20   : > { %436 = vmatpush.bf16.msra.mxu0 %v671_v6  ;;  %687 = vmatpush.bf16.msra.mxu2 %v671_v6  ;;  %v267_v62 = vunpack.c.l.b16 %v235_v54  ;;  %v268_v63 = vunpack.c.l.b16 %v236_v55  ;;  %v287_v0 = vunpack.c.l.b16 %v247_v56  ;;  %v288_v1 = vunpack.c.l.b16 %v248_v57 }
  0x21   : > { %465 = vmatpush.bf16.msra.mxu1 %v679_v7  ;;  %695 = vmatpush.bf16.msra.mxu3 %v679_v7  ;;  %v291_v2 = vunpack.c.l.b16 %v251_v58  ;;  %v292_v3 = vunpack.c.l.b16 %v252_v59  ;;  %v270_v4 = vpack.c.b16 %v264_v61, %v263_v60 }
  0x22   : > { %v272_v5 = vpack.c.b16 %v268_v63, %v267_v62  ;;  %v294_v6 = vpack.c.b16 %v288_v1, %v287_v0 }
  0x23   : > { %v296_v7 = vpack.c.b16 %v292_v3, %v291_v2 }
  0x24   : > { %437 = vmatpush.bf16.msra.mxu0 %v670_v8  ;;  %688 = vmatpush.bf16.msra.mxu2 %v670_v8  ;;  %v741_v8 = vld [vmem:[%s1009_s3] ss:$0 sm:$0xff] }
  0x25   : > { %466 = vmatpush.bf16.msra.mxu1 %v678_v9  ;;  %696 = vmatpush.bf16.msra.mxu3 %v678_v9 }
  0x28   : > { %438 = vmatpush.bf16.msra.mxu0 %v669_v10  ;;  %689 = vmatpush.bf16.msra.mxu2 %v669_v10 }
  0x29   : > { %467 = vmatpush.bf16.msra.mxu1 %v677_v11  ;;  %697 = vmatpush.bf16.msra.mxu3 %v677_v11 }
  0x2c   : > { %439 = vmatpush.bf16.msra.mxu0 %v668_v25  ;;  %690 = vmatpush.bf16.msra.mxu2 %v668_v25 }
  0x2d   : > { %468 = vmatpush.bf16.msra.mxu1 %v676_v29  ;;  %698 = vmatpush.bf16.msra.mxu3 %v676_v29 }
  0x30   : > { %440 = vmatpush.bf16.msra.mxu0 %v667_v34  ;;  %691 = vmatpush.bf16.msra.mxu2 %v667_v34 }
  0x31   : > { %469 = vmatpush.bf16.msra.mxu1 %v675_v39  ;;  %699 = vmatpush.bf16.msra.mxu3 %v675_v39 }
  0x33   : > { %441 = vmatmul.bf16.vlgmr.msra.gmra.mxu0 %v269_v40  ;;  %451 = vmatmul.bf16.vlgmr.msra.gmra.mxu2 %v271_v41 }
  0x34   : > { %470 = vmatmul.bf16.vlgmr.msra.gmra.mxu1 %v293_v42  ;;  %480 = vmatmul.bf16.vlgmr.msra.gmra.mxu3 %v295_v43 }
  0x43   : > { %446 = vmatmul.bf16.gmra.mxu0 %v270_v4  ;;  %456 = vmatmul.bf16.gmra.mxu2 %v272_v5 }
  0x44   : > { %475 = vmatmul.bf16.gmra.mxu1 %v294_v6  ;;  %485 = vmatmul.bf16.gmra.mxu3 %v296_v7 }
  0xb0   : > { %v442_v9 = vpop.f32.mrf.mxu0 }
  0xb1   : > { %v443_v10 = vadd.f32 %v741_v8, %v442_v9  ;;  %v471_v11 = vpop.f32.mrf.mxu1 }
  0xb3   : > { %v472_v12 = vadd.f32 %v471_v11, %v443_v10 }
  0xb5   : > { %491 = vst [vmem:[%s962_s11] sm:$0xff] %v472_v12 }
  0xb6   : > { %v452_v13 = vpop.f32.mrf.mxu2 }
  0xb7   : > { %v453_v14 = vadd.f32 %v741_v8, %v452_v13  ;;  %v481_v15 = vpop.f32.mrf.mxu3 }
  0xb8   : > { %v444_v16 = vpop.f32.mrf.mxu0 }
  0xb9   : > { %v482_v17 = vadd.f32 %v481_v15, %v453_v14  ;;  %v445_v18 = vadd.f32 %v741_v8, %v444_v16  ;;  %v473_v19 = vpop.f32.mrf.mxu1 }
  0xbb   : > { %495 = vst [vmem:[%s962_s11 + $0x20] sm:$0xff] %v482_v17  ;;  %v474_v20 = vadd.f32 %v473_v19, %v445_v18 }
  0xbd   : > { %492 = vst [vmem:[%s962_s11 + $0x8] sm:$0xff] %v474_v20 }
  0xbe   : > { %v454_v21 = vpop.f32.mrf.mxu2 }
  0xbf   : > { %v455_v22 = vadd.f32 %v741_v8, %v454_v21  ;;  %v483_v23 = vpop.f32.mrf.mxu3 }
  0xc0   : > { %v447_v24 = vpop.f32.mrf.mxu0 }
  0xc1   : > { %v484_v25 = vadd.f32 %v483_v23, %v455_v22  ;;  %v448_v26 = vadd.f32 %v741_v8, %v447_v24  ;;  %v476_v27 = vpop.f32.mrf.mxu1 }
  0xc3   : > { %496 = vst [vmem:[%s962_s11 + $0x28] sm:$0xff] %v484_v25  ;;  %v477_v28 = vadd.f32 %v476_v27, %v448_v26 }
  0xc5   : > { %493 = vst [vmem:[%s962_s11 + $0x10] sm:$0xff] %v477_v28 }
  0xc6   : > { %v457_v29 = vpop.f32.mrf.mxu2 }
  0xc7   : > { %v458_v30 = vadd.f32 %v741_v8, %v457_v29  ;;  %v486_v31 = vpop.f32.mrf.mxu3 }
  0xc8   : > { %v449_v32 = vpop.f32.mrf.mxu0 }
  0xc9   : > { %v487_v33 = vadd.f32 %v486_v31, %v458_v30  ;;  %v450_v34 = vadd.f32 %v741_v8, %v449_v32  ;;  %v478_v35 = vpop.f32.mrf.mxu1 }
  0xcb   : > { %497 = vst [vmem:[%s962_s11 + $0x30] sm:$0xff] %v487_v33  ;;  %v479_v36 = vadd.f32 %v478_v35, %v450_v34 }
  0xcd   : > { %494 = vst [vmem:[%s962_s11 + $0x18] sm:$0xff] %v479_v36 }
  0xce   : > { %v459_v37 = vpop.f32.mrf.mxu2 }
  0xcf   : > { %v460_v38 = vadd.f32 %v741_v8, %v459_v37  ;;  %v488_v39 = vpop.f32.mrf.mxu3 }
  0xd1   : > { %v489_v40 = vadd.f32 %v488_v39, %v460_v38 }
  0xd3   : > { %498 = vst [vmem:[%s962_s11 + $0x38] sm:$0xff] %v489_v40 }
  0xd4   : > { %769 = shalt.err (!%p766_p3)
}
  0xd5   : > { %s806_s7 = smov 128   ;;  %s807_s5 = smov 8  }
  0xd6   : > { %700 = dma.vmem_to_hbm [thread:$0]  (%p871_p5), %s513_s22, 1024, %s515_s23, %s500_s19, %s806_s7, %s806_s7, %s807_s5  }
  0xd7 PF: > { %p706_p4 = scmp.ge.s32.totalorder %s804_s18, 2  ;;  %s529_s10 = sand.u32 1, %s792_s15  }
  0xd8   : > { %s530_s11 = scalar_lea.sflag [#allocation3], %s529_s10 }
  0xd9   : > { %p703_p7 = pnand %p706_p4, %p875_p6 }
  0xdb   : > { %p704_p8 = pneg %p703_p7 }
  0xdd   : > { %787 = dma.done.wait (%p704_p8), %s530_s11, 1024  }
  0xde   : > { %789 = vsyncadd (%p704_p8), %s530_s11, 4294966272  ;;  %p14_p9 = scmp.ge.s32.totalorder %s858_s21, 6   ;;  %s1013_s15 = smov %s796_s16 }
  0xdf   : > { %s1014_s16 = smov %s800_s17  ;;  %s1015_s17 = smov %s869_s24 }
  0xe0   : > { %s1016_s18 = smov %s858_s21  ;;  %16 = sbr.rel (!%p14_p9) target bundleno = 3 (0x3), region = 74 }
  0xe5   :  { %536 = vsyncpa [#allocation3], 1 }
  0xe6   :  { %538 = vsyncpa [#allocation3 + $0x1], 1 }

</bundles_post_ra>
